<compile_context>
chip_gen: v5e
topology: v5e:2x2
jax: 0.10.0
libtpu: 0.0.40
codegen_flags: <defaults>
</compile_context>

<pallas_src>
import jax
import jax.numpy as jnp
from jax.experimental import pallas as pl
from jax.experimental.pallas import tpu as pltpu


def _round_up(n, m):
    return ((n + m - 1) // m) * m


def _cdiv(a, b):
    return -(-a // b)


def _policy_kernel(x_ref, p1_ref, p2_ref, out_ref):
    """One batch tile: fused Linear+ReLU -> fused heads -> 2-class softmax.

    x_ref   : (TB, SP)   states with a constant 1.0 column at index `state`
    p1_ref  : (SP, HP)   rows 0..S-1 = W1.T, row S = [b1 | 1.0 at lane hidden]
    p2_ref  : (HP, 128)  rows 0..H-1 = [Wa.T | Wv.T | 0], row H = [ba | bv | 0]
    out_ref : (TB, 8)    lanes 0-1 = probs, lane 2 = value, lanes 3-7 = 0
    """
    # Hidden layer: bias folded into the matmul via the 1.0 column of x.
    h = jnp.maximum(
        jnp.dot(x_ref[...], p1_ref[...], preferred_element_type=jnp.float32),
        0.0)                                               # (TB, HP), h[:,H]==1

    # Fused action + value heads (biases folded via h[:, hidden] == 1).
    heads = jnp.dot(h, p2_ref[...], preferred_element_type=jnp.float32)

    s0 = heads[:, 0:1]
    s1 = heads[:, 1:2]
    val = heads[:, 2:3]

    # Explicit, overflow-safe 2-class softmax (no XLU cross-lane reductions,
    # never normalizes over padded lanes).
    d = s1 - s0
    e = jnp.exp(-jnp.abs(d))                               # <= 1, no overflow
    inv = 1.0 / (1.0 + e)
    prob0 = jnp.where(d > 0, e * inv, inv)
    prob1 = jnp.where(d > 0, inv, e * inv)

    # Narrow 8-lane result tile: lane 0 = p0, lane 1 = p1, lane 2 = value.
    lane = jax.lax.broadcasted_iota(jnp.int32, (heads.shape[0], 8), 1)
    res8 = jnp.where(lane == 0, prob0,
                     jnp.where(lane == 1, prob1,
                               jnp.where(lane == 2, val, 0.0)))
    out_ref[...] = res8.astype(out_ref.dtype)


def pack_params(params):
    """One-time init glue: transpose, fuse heads, fold biases, zero-pad to
    lane-dense packed operands. Nothing here runs on the per-call hot path."""
    w1 = params["affine1_w"].astype(jnp.float32)   # (H, S)
    b1 = params["affine1_b"].astype(jnp.float32)   # (H,)
    wa = params["action_w"].astype(jnp.float32)    # (2, H)
    ba = params["action_b"].astype(jnp.float32)    # (2,)
    wv = params["value_w"].astype(jnp.float32)     # (1, H)
    bv = params["value_b"].astype(jnp.float32)     # (1,)

    hidden, state = w1.shape
    # Guarantee hidden < hidden_pad so the bias-carrier lane exists even when
    # hidden is an exact multiple of 128.
    hidden_pad = _round_up(hidden + 1, 128)
    state_pad = _round_up(state + 1, 8)

    # pack1: [W1.T ; b1-row] padded to (state_pad, hidden_pad).
    # Row `state` is the bias row (matched by the 1.0 column appended to x);
    # its lane `hidden` is 1.0 so h[:, hidden] == 1 after ReLU.
    pack1 = jnp.zeros((state_pad, hidden_pad), jnp.float32)
    pack1 = pack1.at[:state, :hidden].set(w1.T)
    pack1 = pack1.at[state, :hidden].set(b1)
    pack1 = pack1.at[state, hidden].set(1.0)

    # pack2: fused heads [Wa.T | Wv.T | 0]; row `hidden` carries [ba | bv | 0].
    pack2 = jnp.zeros((hidden_pad, 128), jnp.float32)
    pack2 = pack2.at[:hidden, 0:2].set(wa.T)
    pack2 = pack2.at[:hidden, 2:3].set(wv.T)
    pack2 = pack2.at[hidden, 0:2].set(ba)
    pack2 = pack2.at[hidden, 2].set(bv[0])

    return pack1, pack2


def policy_forward(x, pack1, pack2):
    """x: (B, state_size) float32. pack1/pack2: packed params from pack_params."""
    batch, state = x.shape
    state_pad = pack1.shape[0]

    # Balanced batch tiling: cap tile rows, avoid near-empty trailing tiles,
    # and keep an even number of grid steps (>1) so v7x's two TensorCores
    # both get work via "parallel" semantics.
    TB_CAP = 4096
    n_tiles = _cdiv(batch, TB_CAP)
    if n_tiles > 1 and n_tiles % 2 == 1:
        n_tiles += 1
    tb = _round_up(_cdiv(batch, n_tiles), 8)
    b_pad = tb * n_tiles

    # Pad batch rows and append the constant 1.0 bias column at index `state`.
    x1 = jnp.zeros((b_pad, state_pad), jnp.float32)
    x1 = x1.at[:batch, :state].set(x.astype(jnp.float32))
    x1 = x1.at[:, state].set(1.0)

    out = pl.pallas_call(
        _policy_kernel,
        out_shape=jax.ShapeDtypeStruct((b_pad, 8), jnp.float32),
        grid_spec=pltpu.PrefetchScalarGridSpec(
            num_scalar_prefetch=0,
            grid=(n_tiles,),
            in_specs=[
                pl.BlockSpec((tb, state_pad), lambda i: (i, 0)),
                pl.BlockSpec(pack1.shape, lambda i: (0, 0)),
                pl.BlockSpec(pack2.shape, lambda i: (0, 0)),
            ],
            out_specs=pl.BlockSpec((tb, 8), lambda i: (i, 0)),
        ),
        compiler_params=pltpu.CompilerParams(
            dimension_semantics=("parallel",),
            vmem_limit_bytes=32 * 1024 * 1024,
        ),
    )(x1, pack1, pack2)

    probs = out[:batch, 0:2]
    value = out[:batch, 2:3]
    return probs, value


def init_params(key, state_size, hidden_size):
    """Deterministic init mimicking nn.Linear default (uniform +/- 1/sqrt(fan_in))."""
    ks = jax.random.split(key, 6)

    def unif(k, shape, fan_in):
        bound = 1.0 / jnp.sqrt(jnp.float32(fan_in))
        return jax.random.uniform(k, shape, jnp.float32, -bound, bound)

    return {
        "affine1_w": unif(ks[0], (hidden_size, state_size), state_size),
        "affine1_b": unif(ks[1], (hidden_size,), state_size),
        "action_w":  unif(ks[2], (2, hidden_size), hidden_size),
        "action_b":  unif(ks[3], (2,), hidden_size),
        "value_w":   unif(ks[4], (1, hidden_size), hidden_size),
        "value_b":   unif(ks[5], (1,), hidden_size),
    }


def reference_forward(x, p):
    h = jnp.maximum(x @ p["affine1_w"].T + p["affine1_b"], 0.0)
    scores = h @ p["action_w"].T + p["action_b"]
    probs = jax.nn.softmax(scores, axis=-1)
    value = h @ p["value_w"].T + p["value_b"]
    return probs, value


if __name__ == "__main__":
    # Small shapes consistent with the module (CartPole-style state).
    batch, state_size, hidden_size = 8, 4, 32

    key = jax.random.PRNGKey(0)
    kx, kp = jax.random.split(key)
    x = jax.random.normal(kx, (batch, state_size), jnp.float32)
    params = init_params(kp, state_size, hidden_size)

    # One-time parameter packing (hoisted out of the per-call path).
    pack1, pack2 = pack_params(params)
    jax.block_until_ready((pack1, pack2))

    probs, value = policy_forward(x, pack1, pack2)
    jax.block_until_ready((probs, value))

    # Sanity check against a pure-JAX reference of the same math.
    ref_probs, ref_value = reference_forward(x, params)
    assert probs.shape == (batch, 2) and value.shape == (batch, 1)
    assert jnp.allclose(probs, ref_probs, atol=1e-5, rtol=1e-5)
    assert jnp.allclose(value, ref_value, atol=1e-5, rtol=1e-5)
    assert jnp.allclose(jnp.sum(probs, axis=-1), 1.0, atol=1e-5)

    # TODO(synk): saved_actions / rewards buffers and Categorical sampling are
    # training-loop state, not part of the forward pass, so they are omitted.
    print("KERNEL_OK")
</pallas_src>

<mosaic_0001>
module attributes {stable_mosaic.version = 11 : i64} {
  func.func @_policy_kernel(%arg0: i32, %arg1: memref<8x8xf32, #tpu.memory_space<vmem>>, %arg2: memref<8x128xf32, #tpu.memory_space<vmem>>, %arg3: memref<128x128xf32, #tpu.memory_space<vmem>>, %arg4: memref<8x8xf32, #tpu.memory_space<vmem>>) attributes {dimension_semantics = [#tpu.dimension_semantics<parallel>], iteration_bounds = array<i64: 1>, scalar_prefetch = 0 : i64, scratch_operands = 0 : i64, tpu.core_type = #tpu.core_type<tc>, window_params = [{transform_indices = @transform_0, window_bounds = array<i64: 8, 8>}, {pipeline_mode = #tpu.pipeline_mode<synchronous>, transform_indices = @transform_1, window_bounds = array<i64: 8, 128>}, {pipeline_mode = #tpu.pipeline_mode<synchronous>, transform_indices = @transform_2, window_bounds = array<i64: 128, 128>}, {transform_indices = @transform_3, window_bounds = array<i64: 8, 8>}]} {
    %c0 = arith.constant 0 : index
    %c0_0 = arith.constant 0 : index
    %0 = vector.load %arg1[%c0, %c0_0] : memref<8x8xf32, #tpu.memory_space<vmem>>, vector<8x8xf32>
    %c0_1 = arith.constant 0 : index
    %c0_2 = arith.constant 0 : index
    %1 = vector.load %arg2[%c0_1, %c0_2] : memref<8x128xf32, #tpu.memory_space<vmem>>, vector<8x128xf32>
    %cst = arith.constant dense<0.000000e+00> : vector<8x128xf32>
    %2 = tpu.matmul %0, %1, %cst {dimension_numbers = #tpu.dot_dimension_numbers<[1], [0], [0], [1], [0, 0, 1, 1], [], []>} : vector<8x8xf32>, vector<8x128xf32>, vector<8x128xf32> -> vector<8x128xf32>
    %cst_3 = arith.constant 0.000000e+00 : f32
    %3 = vector.broadcast %cst_3 : f32 to vector<8x128xf32>
    %4 = arith.maximumf %2, %3 : vector<8x128xf32>
    %c0_4 = arith.constant 0 : index
    %c0_5 = arith.constant 0 : index
    %5 = vector.load %arg3[%c0_4, %c0_5] : memref<128x128xf32, #tpu.memory_space<vmem>>, vector<128x128xf32>
    %cst_6 = arith.constant dense<0.000000e+00> : vector<8x128xf32>
    %6 = tpu.matmul %4, %5, %cst_6 {dimension_numbers = #tpu.dot_dimension_numbers<[1], [0], [0], [1], [0, 0, 1, 1], [], []>} : vector<8x128xf32>, vector<128x128xf32>, vector<8x128xf32> -> vector<8x128xf32>
    %7 = vector.extract_strided_slice %6 {offsets = [0, 0], sizes = [8, 1], strides = [1, 1]} : vector<8x128xf32> to vector<8x1xf32>
    %8 = vector.extract_strided_slice %6 {offsets = [0, 1], sizes = [8, 1], strides = [1, 1]} : vector<8x128xf32> to vector<8x1xf32>
    %9 = vector.extract_strided_slice %6 {offsets = [0, 2], sizes = [8, 1], strides = [1, 1]} : vector<8x128xf32> to vector<8x1xf32>
    %10 = arith.subf %8, %7 : vector<8x1xf32>
    %11 = math.absf %10 : vector<8x1xf32>
    %cst_7 = arith.constant 0.000000e+00 : f32
    %12 = vector.broadcast %cst_7 : f32 to vector<8x1xf32>
    %13 = arith.subf %12, %11 : vector<8x1xf32>
    %14 = math.exp %13 : vector<8x1xf32>
    %cst_8 = arith.constant 1.000000e+00 : f32
    %15 = vector.broadcast %cst_8 : f32 to vector<8x1xf32>
    %16 = arith.addf %15, %14 : vector<8x1xf32>
    %cst_9 = arith.constant 1.000000e+00 : f32
    %17 = vector.broadcast %cst_9 : f32 to vector<8x1xf32>
    %18 = arith.divf %17, %16 : vector<8x1xf32>
    %cst_10 = arith.constant 0.000000e+00 : f32
    %19 = vector.broadcast %cst_10 : f32 to vector<8x1xf32>
    %20 = arith.cmpf ogt, %10, %19 : vector<8x1xf32>
    %21 = arith.mulf %14, %18 : vector<8x1xf32>
    %22 = arith.select %20, %21, %18 : vector<8x1xi1>, vector<8x1xf32>
    %cst_11 = arith.constant 0.000000e+00 : f32
    %23 = vector.broadcast %cst_11 : f32 to vector<8x1xf32>
    %24 = arith.cmpf ogt, %10, %23 : vector<8x1xf32>
    %25 = arith.mulf %14, %18 : vector<8x1xf32>
    %26 = arith.select %24, %18, %25 : vector<8x1xi1>, vector<8x1xf32>
    %27 = tpu.iota {dimensions = array<i32: 1>} : vector<8x8xi32>
    %c0_i32 = arith.constant 0 : i32
    %28 = vector.broadcast %c0_i32 : i32 to vector<8x8xi32>
    %29 = arith.cmpi eq, %27, %28 : vector<8x8xi32>
    %c1_i32 = arith.constant 1 : i32
    %30 = vector.broadcast %c1_i32 : i32 to vector<8x8xi32>
    %31 = arith.cmpi eq, %27, %30 : vector<8x8xi32>
    %c2_i32 = arith.constant 2 : i32
    %32 = vector.broadcast %c2_i32 : i32 to vector<8x8xi32>
    %33 = arith.cmpi eq, %27, %32 : vector<8x8xi32>
    %cst_12 = arith.constant 0.000000e+00 : f32
    %34 = vector.shape_cast %9 : vector<8x1xf32> to vector<8x1xf32>
    %35 = vector.broadcast %34 : vector<8x1xf32> to vector<8x8xf32>
    %36 = vector.broadcast %cst_12 : f32 to vector<8x8xf32>
    %37 = arith.select %33, %35, %36 : vector<8x8xi1>, vector<8x8xf32>
    %38 = vector.shape_cast %26 : vector<8x1xf32> to vector<8x1xf32>
    %39 = vector.broadcast %38 : vector<8x1xf32> to vector<8x8xf32>
    %40 = arith.select %31, %39, %37 : vector<8x8xi1>, vector<8x8xf32>
    %41 = vector.shape_cast %22 : vector<8x1xf32> to vector<8x1xf32>
    %42 = vector.broadcast %41 : vector<8x1xf32> to vector<8x8xf32>
    %43 = arith.select %29, %42, %40 : vector<8x8xi1>, vector<8x8xf32>
    %c0_13 = arith.constant 0 : index
    %c0_14 = arith.constant 0 : index
    %44 = vector.load %arg4[%c0_13, %c0_14] : memref<8x8xf32, #tpu.memory_space<vmem>>, vector<8x8xf32>
    tpu.vector_store %arg4[%c0_13, %c0_14], %43 {strides = array<i32>} : memref<8x8xf32, #tpu.memory_space<vmem>>, vector<8x8xf32>,
    return
  }
  func.func @transform_0(%arg0: i32) -> (i32, i32) {
    %c0_i32 = arith.constant 0 : i32
    %c0_i32_0 = arith.constant 0 : i32
    return %arg0, %c0_i32 : i32, i32
  }
  func.func @transform_1(%arg0: i32) -> (i32, i32) {
    %c0_i32 = arith.constant 0 : i32
    %c0_i32_0 = arith.constant 0 : i32
    %c0_i32_1 = arith.constant 0 : i32
    return %c0_i32, %c0_i32_0 : i32, i32
  }
  func.func @transform_2(%arg0: i32) -> (i32, i32) {
    %c0_i32 = arith.constant 0 : i32
    %c0_i32_0 = arith.constant 0 : i32
    %c0_i32_1 = arith.constant 0 : i32
    return %c0_i32, %c0_i32_0 : i32, i32
  }
  func.func @transform_3(%arg0: i32) -> (i32, i32) {
    %c0_i32 = arith.constant 0 : i32
    %c0_i32_0 = arith.constant 0 : i32
    return %arg0, %c0_i32 : i32, i32
  }
}

</mosaic_0001>

<bundles_post_ra>
// kernel: tpu_custom_call.1
= control target key start
LH: loop header
LB: loop body
LE: loop exit
PB: predicated region body
PF: predicated region fallthrough
CT: control target
= control target key end

     0   :  { %8 = vsyncpa [#allocation3], 0  ;;  %s353_s0 = inlined_call_operand.hbm [shape: f32[8,8], index: 0, kind: input, shape index: {}]   ;;  %s354_s1 = inlined_call_operand.hbm [shape: f32[8,128], index: 1, kind: input, shape index: {}]   ;;  %s355_s2 = inlined_call_operand.hbm [shape: f32[128,128], index: 2, kind: input, shape index: {}]   ;;  %s356_s3 = inlined_call_operand.hbm [shape: f32[8,8], index: 3, kind: output, shape index: {}]  }
   0x1   :  { %9 = vsyncpa [#allocation6], 0  ;;  %s27_s14 = sshll.u32 %s354_s1, 4  ;;  %s28_s14 = int_to_ptr.hbm [resolvable:$true] %s27_s14 }
   0x2   :  { %10 = vsyncpa [#allocation4], 0  ;;  %s310_s15 = smov [#allocation5]   ;;  %s16_s19 = sshll.u32 %s353_s0, 4  ;;  %s17_s19 = int_to_ptr.hbm [resolvable:$true] %s16_s19 }
   0x3   :  { %s29_s16 = sshll.u32 %s310_s15, 4  ;;  %s311_s20 = smov [#allocation2]   ;;  %s30_s16 = int_to_ptr.vmem [resolvable:$true] %s29_s16 }
   0x4   :  { %32 = dma.hbm_to_vmem [thread:$0]  %s28_s14, 128, %s30_s16, [#allocation6]  }
   0x5   :  { %s18_s21 = sshll.u32 %s311_s20, 4  ;;  %s37_s24 = sshll.u32 %s355_s2, 4  ;;  %s19_s21 = int_to_ptr.vmem [resolvable:$true] %s18_s21  ;;  %s38_s24 = int_to_ptr.hbm [resolvable:$true] %s37_s24 }
   0x6   :  { %21 = dma.hbm_to_vmem [thread:$0]  %s17_s19, 128, %s19_s21, [#allocation3]  }
   0x7   :  { %s312_s1 = smov [#allocation7]   ;;  %s313_s26 = smov 128  }
   0x8   :  { %s39_s25 = sshll.u32 %s312_s1, 4  ;;  %s314_s27 = smov 8   ;;  %s40_s25 = int_to_ptr.vmem [resolvable:$true] %s39_s25 }
   0x9   :  { %45 = dma.hbm_to_vmem [thread:$0]  %s38_s24, 2048, %s40_s25, [#allocation6], %s313_s26, %s313_s26, %s314_s27  }
   0xa   :  { %304 = dma.done.wait [#allocation3], 128  }
   0xb   :  { %305 = vsyncadd [#allocation3], 4294967168 }
   0xc   :  { %306 = dma.done.wait [#allocation6], 2176  }
   0xd   :  { %307 = vsyncadd [#allocation6], 4294965120  ;;  %vm60_vm0 = vcmask 64512   ;;  %v59_v0 = vld [vmem:[#allocation5] sm:$0xff]  ;;  %v58_v1 = vld [vmem:[#allocation2] sm:$0xff]  ;;  %v315_v20 = vmov 2   ;;  %v150_v43 = vlaneseq }
   0xe   :  { %v100_v2 = vld [vmem:[#allocation7 + $0x78] sm:$0xff]  ;;  %79 = vmatpush.msra.mxu0 %v59_v0  ;;  %v99_v3 = vld [vmem:[#allocation7 + $0x70] sm:$0xff]  ;;  %v98_v4 = vld [vmem:[#allocation7 + $0x68] sm:$0xff]  ;;  %201 = vset.pattern.permute.xlu0 %v315_v20  ;;  %s316_s0 = smov 1   ;;  %v317_v22 = vmov 1   ;;  %s318_s2 = smov [#allocation8]  }
   0xf   :  { %101 = vmatpush.msra.mxu1 %v100_v2  ;;  %191 = vmatmul.msk.f32.vlgmr.msra.gmra.mxu0 %vm60_vm0, %v58_v1  ;;  %v97_v5 = vld [vmem:[#allocation7 + $0x60] sm:$0xff]  ;;  %v96_v6 = vld [vmem:[#allocation7 + $0x58] sm:$0xff]  ;;  %v95_v7 = vld [vmem:[#allocation7 + $0x50] sm:$0xff]  ;;  %v151_v44 = vand.u32 127, %v150_v43  ;;  %s178_s28 = sshll.u32 %s318_s2, 4  ;;  %s180_s4 = sshll.u32 %s356_s3, 4  ;;  %s179_s28 = int_to_ptr.vmem [resolvable:$true] %s178_s28  ;;  %s181_s4 = int_to_ptr.hbm [resolvable:$true] %s180_s4 }
  0x10   :  { %v94_v8 = vld [vmem:[#allocation7 + $0x48] sm:$0xff]  ;;  %v93_v9 = vld [vmem:[#allocation7 + $0x40] sm:$0xff]  ;;  %v92_v10 = vld [vmem:[#allocation7 + $0x38] sm:$0xff]  ;;  %202 = vset.pattern.permute.xlu1 %v317_v22 }
  0x11   :  { %102 = vmatpush.msra.mxu1 %v99_v3  ;;  %v91_v11 = vld [vmem:[#allocation7 + $0x30] sm:$0xff]  ;;  %v90_v12 = vld [vmem:[#allocation7 + $0x28] sm:$0xff]  ;;  %v89_v13 = vld [vmem:[#allocation7 + $0x20] sm:$0xff]  ;;  %vm154_vm6 = vcmp.eq.s32.totalorder %v151_v44, 2  ;;  %vm153_vm7 = vcmp.eq.s32.totalorder %v151_v44, 1  ;;  %vm152_vm8 = vcmp.eq.s32.totalorder %v151_v44, 0 }
  0x12   :  { %v88_v14 = vld [vmem:[#allocation7 + $0x18] sm:$0xff]  ;;  %v87_v15 = vld [vmem:[#allocation7 + $0x10] sm:$0xff]  ;;  %v86_v16 = vld [vmem:[#allocation7 + $0x8] sm:$0xff] }
  0x13   :  { %103 = vmatpush.msra.mxu1 %v98_v4  ;;  %v85_v17 = vld [vmem:[#allocation7] sm:$0xff] }
  0x15   :  { %104 = vmatpush.msra.mxu1 %v97_v5 }
  0x17   :  { %105 = vmatpush.msra.mxu1 %v96_v6 }
  0x19   :  { %106 = vmatpush.msra.mxu1 %v95_v7 }
  0x1b   :  { %107 = vmatpush.msra.mxu1 %v94_v8 }
  0x1d   :  { %108 = vmatpush.msra.mxu1 %v93_v9 }
  0x1f   :  { %109 = vmatpush.msra.mxu1 %v92_v10 }
  0x21   :  { %110 = vmatpush.msra.mxu1 %v91_v11 }
  0x23   :  { %111 = vmatpush.msra.mxu1 %v90_v12 }
  0x25   :  { %112 = vmatpush.msra.mxu1 %v89_v13 }
  0x27   :  { %113 = vmatpush.msra.mxu1 %v88_v14 }
  0x29   :  { %114 = vmatpush.msra.mxu1 %v87_v15 }
  0x2b   :  { %115 = vmatpush.msra.mxu1 %v86_v16 }
  0x2d   :  { %116 = vmatpush.msra.mxu1 %v85_v17 }
  0x8c   :  { %v81_v18 = vpop.f32.mrf.mxu0 }
  0x8d   :  { %v84_v19 = vmax.f32 %v81_v18, 0.0 }
  0x8f   :  { %117 = vmatmul.f32.vlgmr.msra.gmra.mxu1 %v84_v19 }
 0x10c   :  { %v118_v21 = vpop.f32.mrf.mxu1 }
 0x10d   :  { %122 = vrot.lane.b32.xlu0 %v118_v21, %s316_s0 }
 0x115   :  { %156 = vperm.xlu0 %201, %v118_v21  }
 0x11d   :  { %203 = vset.pattern.permute.xlu0 %v317_v22 }
 0x17f   :  { %v123_v23 = vpop.permute.xlu0 %122 }
 0x180   :  { %v125_v24 = vsub.f32 %v118_v21, %v123_v23 }
 0x182   :  { %v126_v25 = vand.u32 2147483647, %v125_v24  ;;  %vm146_vm5 = vcmp.gt.f32.partialorder %v125_v24, 0.0 }
 0x184   :  { %v127_v26 = vsub.f32 0.0, %v126_v25 }
 0x186   :  { %v128_v27 = vmul.f32 1.442695, %v127_v26 }
 0x187   :  { %v157_v46 = vpop.permute.xlu0 %156 }
 0x188   :  { %204 = vpow2.f32 %v128_v27  ;;  %v159_v47 = vsel %vm154_vm6, %v157_v46, 0.0 }
 0x18e   :  { %v205_v28 = vpop.eup %204 }
 0x18f   :  { %v130_v29 = vadd.f32 1.0, %v205_v28 }
 0x191   :  { %206 = vrcp.f32 %v130_v29  ;;  %v142_v33 = vand.u32 2147483648, %v130_v29  ;;  %v140_v35 = vand.u32 2147483647, %v130_v29  ;;  %vm136_vm2 = vweird.f32 %v130_v29 }
 0x193   :  { %v143_v37 = vor.u32 1.1754944e-38, %v142_v33  ;;  %vm141_vm4 = vcmp.eq.f32.partialorder %v140_v35, 8.507059e+37 }
 0x197   :  { %v207_v30 = vpop.eup %206 }
 0x198   :  { %v132_v31 = vmul.f32 %v207_v30, %v130_v29  ;;  %vm137_vm1 = vweird.f32 %v207_v30 }
 0x199   :  { %vm138_vm3 = vmor %vm136_vm2, %vm137_vm1 }
 0x19a   :  { %v133_v32 = vsub.f32 1.0, %v132_v31 }
 0x19c   :  { %v134_v34 = vmul.f32 %v207_v30, %v133_v32 }
 0x19e   :  { %v135_v36 = vadd.f32 %v207_v30, %v134_v34 }
 0x1a0   :  { %v139_v38 = vsel %vm138_vm3, %v207_v30, %v135_v36 }
 0x1a1   :  { %v144_v39 = vsel %vm141_vm4, %v143_v37, %v139_v38 }
 0x1a2   :  { %v147_v40 = vmul.f32 %v205_v28, %v144_v39 }
 0x1a4   :  { %v149_v41 = vsel %vm146_vm5, %v144_v39, %v147_v40  ;;  %v148_v42 = vsel %vm146_vm5, %v147_v40, %v144_v39 }
 0x1a5   :  { %162 = vperm.xlu1 %202, %v149_v41  }
 0x1ad   :  { %168 = vperm.xlu1 %202, %v148_v42  }
 0x217   :  { %v163_v45 = vpop.permute.xlu1 %162 }
 0x218   :  { %v165_v48 = vsel %vm153_vm7, %v163_v45, %v159_v47 }
 0x21f   :  { %v169_v49 = vpop.permute.xlu1 %168 }
 0x220   :  { %v171_v50 = vsel %vm152_vm8, %v169_v49, %v165_v48 }
 0x221   :  { %172 = vst.msk [vmem:[#allocation8] sm:$0xff] %vm60_vm0, %v171_v50 }
 0x222   :  { %183 = dma.vmem_to_hbm [thread:$0]  %s179_s28, 128, %s181_s4, [#allocation4]  }
 0x223   :  { %308 = dma.done.wait [#allocation4], 128  }
 0x224   :  { %309 = vsyncadd [#allocation4], 4294967168 }
 0x225   :  { %188 = vsyncpa [#allocation3], 1 }
 0x226   :  { %189 = vsyncpa [#allocation6], 1 }
 0x227   :  { %190 = vsyncpa [#allocation4], 1 }

</bundles_post_ra>
